<compile_context>
chip_gen: v6e
topology: v6e:2x2x1
jax: 0.10.0
libtpu: 0.0.40
codegen_flags: <defaults>
</compile_context>

<pallas_src>
import functools

import jax
import jax.numpy as jnp
from jax import lax
from jax.experimental import pallas as pl
from jax.experimental.pallas import tpu as pltpu

LANES = 128
TILE_ROWS_32BIT = 4096      # (4096,128) f32 block  = 2 MiB per input per buffer
TILE_ROWS_16BIT = 8192      # (8192,128) bf16 block = 2 MiB per input per buffer
ACC_ROWS = 64               # per-core accumulator rows (8 f32 vregs)
SMALL_MAX_ROWS = 1024       # n <= 1024*128 elements -> single-block scalar path
SMALL_ROW_QUANTUM = 16      # sublane quantum covering f32 (8) and bf16/f16 (16)


def _round_up(a: int, b: int) -> int:
    return (a + b - 1) // b * b


def _tensorcores_per_chip() -> int:
    """Best-effort TensorCores-per-chip count; a fallback of 1 is always correct."""
    try:
        kind = jax.devices()[0].device_kind.lower()
    except Exception:
        return 1
    # v7x (and v4/v5p megacore) expose 2 TCs to one program; v5e/v6e have 1.
    if any(tag in kind for tag in ("v4", "v5p", "v5 p", "v7", "7x")):
        return 2
    return 1


# ----------------------------- kernels --------------------------------------


def _bce_stream_kernel(x_ref, t_ref, o_ref, acc_ref, *, rows, tile_rows,
                       steps_per_core, may_be_partial):
    c = pl.program_id(0)          # TensorCore split axis ("parallel")
    j = pl.program_id(1)          # streaming / reduction axis ("arbitrary")

    @pl.when(j == 0)
    def _():
        acc_ref[...] = jnp.zeros_like(acc_ref)

    def accumulate(p, t):
        # PyTorch BCELoss clamps each log term at -100 to avoid -inf.
        log_p = jnp.maximum(jnp.log(p), -100.0)
        log_1mp = jnp.maximum(jnp.log1p(-p), -100.0)
        # -(t*log_p + (1-t)*log_1mp) == -(t*(log_p - log_1mp) + log_1mp)
        loss = -(t * (log_p - log_1mp) + log_1mp)
        # vreg-shaped accumulation: leading-axis sum is plain VPU adds (no XLU);
        # (64,128) acc = 8 independent add chains per step -> good VPU ILP.
        acc_ref[...] += loss.reshape(
            tile_rows // ACC_ROWS, ACC_ROWS, LANES).sum(axis=0)

    if not may_be_partial:
        # Every block is fully valid: no masking work at all.
        accumulate(x_ref[...].astype(jnp.float32), t_ref[...].astype(jnp.float32))
    else:
        blk = c * steps_per_core + j               # logical (unclamped) block
        partial = (blk + 1) * tile_rows > rows     # runs past the valid rows?

        @pl.when(jnp.logical_not(partial))
        def _():
            # Fast path for interior blocks (no iota / compare / select).
            accumulate(x_ref[...].astype(jnp.float32),
                       t_ref[...].astype(jnp.float32))

        @pl.when(partial)
        def _():
            # Partial last block, or the duplicate clamped block created by an
            # uneven 2-core split.  Masked elements become (p=1, t=1) BEFORE the
            # log so they contribute exactly 0 and OOB garbage (even NaN bit
            # patterns) cannot propagate.
            row_ids = lax.broadcasted_iota(jnp.int32, (tile_rows, LANES), 0)
            valid = (blk * tile_rows + row_ids) < rows
            p = jnp.where(valid, x_ref[...].astype(jnp.float32), 1.0)
            t = jnp.where(valid, t_ref[...].astype(jnp.float32), 1.0)
            accumulate(p, t)

    @pl.when(j == steps_per_core - 1)
    def _():
        o_ref[...] = acc_ref[...]


def _bce_small_kernel(x_ref, t_ref, o_ref, *, inv_n):
    # Input is padded to a full slab with (p=1, t=1), which contributes exactly
    # 0 to the sum, so no masking is needed; divide by the true element count.
    p = x_ref[...].astype(jnp.float32)
    t = t_ref[...].astype(jnp.float32)
    log_p = jnp.maximum(jnp.log(p), -100.0)
    log_1mp = jnp.maximum(jnp.log1p(-p), -100.0)
    loss = -(t * (log_p - log_1mp) + log_1mp)
    o_ref[...] = jnp.sum(loss, keepdims=True) * inv_n


# ----------------------------- wrapper ---------------------------------------


def _native_flat(a):
    # Keep native f32/bf16/f16 (halves HBM traffic for 16-bit inputs);
    # anything else is cast to f32.
    if a.dtype not in (jnp.float32, jnp.bfloat16, jnp.float16):
        a = a.astype(jnp.float32)
    return a.reshape(-1)


def _bce_tail_sum_f32(p, t):
    # Plain-XLA clamped BCE sum for the <128-element ragged tail.
    p = p.astype(jnp.float32)
    t = t.astype(jnp.float32)
    log_p = jnp.maximum(jnp.log(p), -100.0)
    log_1mp = jnp.maximum(jnp.log1p(-p), -100.0)
    return jnp.sum(-(t * (log_p - log_1mp) + log_1mp))


@jax.jit
def bce_loss(input_data: jax.Array, target: jax.Array) -> jax.Array:
    """Mean binary cross-entropy, computed in a Pallas TPU kernel."""
    assert input_data.shape == target.shape, "BCELoss requires matching shapes"
    n = int(input_data.size)
    assert n > 0, "BCELoss over zero elements is undefined"
    out_dtype = (input_data.dtype
                 if jnp.issubdtype(input_data.dtype, jnp.floating) else jnp.float32)

    x = _native_flat(input_data)
    t = _native_flat(target)

    # ---------------- small path: one block, reduce + /n on-chip -------------
    if n <= SMALL_MAX_ROWS * LANES:
        n_pad = _round_up(n, SMALL_ROW_QUANTUM * LANES)
        pad = n_pad - n
        if pad:
            # (p=1, t=1) padding contributes exactly 0 to the loss sum.
            x = jnp.concatenate([x, jnp.ones((pad,), x.dtype)])
            t = jnp.concatenate([t, jnp.ones((pad,), t.dtype)])
        rows = n_pad // LANES
        res = pl.pallas_call(
            functools.partial(_bce_small_kernel, inv_n=1.0 / n),
            out_shape=jax.ShapeDtypeStruct((1, 1), jnp.float32),
            in_specs=[pl.BlockSpec(memory_space=pltpu.MemorySpace.VMEM),
                      pl.BlockSpec(memory_space=pltpu.MemorySpace.VMEM)],
            out_specs=pl.BlockSpec(memory_space=pltpu.MemorySpace.VMEM),
        )(x.reshape(rows, LANES), t.reshape(rows, LANES))
        return res[0, 0].astype(out_dtype)

    # ---------------- streaming path -----------------------------------------
    rows = n // LANES
    n_main = rows * LANES
    rem = n - n_main

    itemsize = max(jnp.dtype(x.dtype).itemsize, jnp.dtype(t.dtype).itemsize)
    target_rows = TILE_ROWS_32BIT if itemsize >= 4 else TILE_ROWS_16BIT
    tile_rows = min(target_rows, _round_up(rows, ACC_ROWS))

    num_blocks = pl.cdiv(rows, tile_rows)
    num_cores = _tensorcores_per_chip()
    num_cores = num_cores if num_blocks >= num_cores else 1
    steps_per_core = pl.cdiv(num_blocks, num_cores)

    # No full padded copy of the inputs: the kernel streams the 128-aligned
    # prefix (free reshape when n % 128 == 0); the tiny tail is reduced in XLA.
    # TODO(synk): when n % 128 != 0 the prefix slice may still materialize a
    # copy in XLA; a manual-DMA (memory_space=pl.ANY) tail path would avoid it.
    x2 = (x if rem == 0 else x[:n_main]).reshape(rows, LANES)
    t2 = (t if rem == 0 else t[:n_main]).reshape(rows, LANES)

    need_clamp = (num_blocks % num_cores) != 0
    if need_clamp:
        def in_index(c, j):
            # An uneven core split points its last (c, j) past the array; clamp
            # the DMA and let the kernel's full-row mask zero that contribution.
            return (jnp.minimum(c * steps_per_core + j, num_blocks - 1), 0)
    else:
        def in_index(c, j):
            return (c * steps_per_core + j, 0)

    may_be_partial = need_clamp or (rows % tile_rows != 0)

    kernel = functools.partial(
        _bce_stream_kernel, rows=rows, tile_rows=tile_rows,
        steps_per_core=steps_per_core, may_be_partial=may_be_partial)

    partials = pl.pallas_call(
        kernel,
        out_shape=jax.ShapeDtypeStruct((num_cores * ACC_ROWS, LANES), jnp.float32),
        grid_spec=pltpu.PrefetchScalarGridSpec(
            num_scalar_prefetch=0,
            grid=(num_cores, steps_per_core),
            in_specs=[
                pl.BlockSpec((tile_rows, LANES), in_index),
                pl.BlockSpec((tile_rows, LANES), in_index),
            ],
            out_specs=pl.BlockSpec((ACC_ROWS, LANES), lambda c, j: (c, 0)),
            scratch_shapes=[pltpu.VMEM((ACC_ROWS, LANES), jnp.float32)],
        ),
        # TODO(synk): if an xprof trace shows the leading axis is not actually
        # sharded across the two v7x TensorCores, switch it to pltpu.CORE_PARALLEL.
        compiler_params=pltpu.CompilerParams(
            dimension_semantics=("parallel", "arbitrary")),
    )(x2, t2)

    total = jnp.sum(partials, dtype=jnp.float32)
    if rem:
        total = total + _bce_tail_sum_f32(x[n_main:], t[n_main:])
    return (total / jnp.float32(n)).astype(out_dtype)


# ----------------------------- reference & test ------------------------------


def _reference_bce(p, t):
    p = p.astype(jnp.float32)
    t = t.astype(jnp.float32)
    log_p = jnp.maximum(jnp.log(p), -100.0)
    log_1mp = jnp.maximum(jnp.log1p(-p), -100.0)
    return jnp.mean(-(t * log_p + (1.0 - t) * log_1mp))


if __name__ == "__main__":
    key = jax.random.PRNGKey(0)

    cases = [
        (2, 4, 16, 16),     # small path (NCHW segmentation-style, the spec shape)
        (2, 4, 129, 129),   # streaming path, ragged: masked last block + XLA tail
        (4, 4, 256, 260),   # streaming path, multi-block (+ uneven core split)
    ]
    loss0 = None
    for i, shape in enumerate(cases):
        k1, k2 = jax.random.split(jax.random.fold_in(key, i))
        # Predictions are probabilities in (0,1) (post-sigmoid), targets in {0,1}.
        input_data = jax.nn.sigmoid(jax.random.normal(k1, shape, dtype=jnp.float32))
        target = (jax.random.uniform(k2, shape) > 0.5).astype(jnp.float32)

        loss = bce_loss(input_data, target)
        jax.block_until_ready(loss)
        if loss0 is None:
            loss0 = loss

        ref = _reference_bce(input_data, target)
        assert jnp.allclose(loss, ref, rtol=1e-4, atol=1e-6), (shape, loss, ref)

    print("KERNEL_OK")
</pallas_src>

<mosaic_0001>
module attributes {stable_mosaic.version = 11 : i64} {
  func.func @_bce_small_kernel(%arg0: memref<16x128xf32, #tpu.memory_space<vmem>>, %arg1: memref<16x128xf32, #tpu.memory_space<vmem>>, %arg2: memref<1x1xf32, #tpu.memory_space<vmem>>) attributes {dimension_semantics = [], scalar_prefetch = 0 : i64, scratch_operands = 0 : i64, tpu.core_type = #tpu.core_type<tc>} {
    %c0 = arith.constant 0 : index
    %c0_0 = arith.constant 0 : index
    %0 = vector.load %arg0[%c0, %c0_0] : memref<16x128xf32, #tpu.memory_space<vmem>>, vector<16x128xf32>
    %c0_1 = arith.constant 0 : index
    %c0_2 = arith.constant 0 : index
    %1 = vector.load %arg1[%c0_1, %c0_2] : memref<16x128xf32, #tpu.memory_space<vmem>>, vector<16x128xf32>
    %2 = math.log %0 : vector<16x128xf32>
    %cst = arith.constant -1.000000e+02 : f32
    %3 = vector.broadcast %cst : f32 to vector<16x128xf32>
    %4 = arith.maximumf %2, %3 : vector<16x128xf32>
    %cst_3 = arith.constant 0.000000e+00 : f32
    %5 = vector.broadcast %cst_3 : f32 to vector<16x128xf32>
    %6 = arith.subf %5, %0 : vector<16x128xf32>
    %7 = math.log1p %6 : vector<16x128xf32>
    %cst_4 = arith.constant -1.000000e+02 : f32
    %8 = vector.broadcast %cst_4 : f32 to vector<16x128xf32>
    %9 = arith.maximumf %7, %8 : vector<16x128xf32>
    %10 = arith.subf %4, %9 : vector<16x128xf32>
    %11 = arith.mulf %1, %10 : vector<16x128xf32>
    %12 = arith.addf %11, %9 : vector<16x128xf32>
    %cst_5 = arith.constant 0.000000e+00 : f32
    %13 = vector.broadcast %cst_5 : f32 to vector<16x128xf32>
    %14 = arith.subf %13, %12 : vector<16x128xf32>
    %15 = vector.shape_cast %14 : vector<16x128xf32> to vector<1x16x128xf32>
    %cst_6 = arith.constant dense<0.000000e+00> : vector<1xf32>
    %16 = vector.multi_reduction <add>, %15, %cst_6 [1, 2] : vector<1x16x128xf32> to vector<1xf32>
    %17 = vector.shape_cast %16 : vector<1xf32> to vector<1x1x1xf32>
    %18 = vector.extract %17[0, 0, 0] : f32 from vector<1x1x1xf32>
    %19 = vector.broadcast %18 : f32 to vector<1x1xf32>
    %cst_7 = arith.constant 4.8828125E-4 : f32
    %20 = vector.broadcast %cst_7 : f32 to vector<1x1xf32>
    %21 = arith.mulf %19, %20 : vector<1x1xf32>
    %c0_8 = arith.constant 0 : index
    %c0_9 = arith.constant 0 : index
    %22 = vector.load %arg2[%c0_8, %c0_9] : memref<1x1xf32, #tpu.memory_space<vmem>>, vector<1x1xf32>
    tpu.vector_store %arg2[%c0_8, %c0_9], %21 {strides = array<i32>} : memref<1x1xf32, #tpu.memory_space<vmem>>, vector<1x1xf32>,
    return
  }
}

</mosaic_0001>

<bundles_post_ra>
// kernel: bce_loss.1
= control target key start
LH: loop header
LB: loop body
LE: loop exit
PB: predicated region body
PF: predicated region fallthrough
CT: control target
= control target key end

     0   :  { %s144_s0 = inlined_call_operand.vmem [shape: f32[16,128], index: 0, kind: input, shape index: {}]   ;;  %s145_s1 = inlined_call_operand.vmem [shape: f32[16,128], index: 1, kind: input, shape index: {}]   ;;  %s146_s2 = inlined_call_operand.hbm [shape: f32[1,1], index: 2, kind: output, shape index: {}]  }
   0x1   :  { %v12_v0 = vld [vmem:[%s144_s0] sm:$0xff]  ;;  %v13_v1 = vld [vmem:[%s144_s0 + $0x8] sm:$0xff] }
   0x2   :  { %83 = vlog2.f32 %v12_v0  ;;  %v22_v2 = vsub.f32 0.0, %v12_v0  ;;  %v23_v3 = vsub.f32 0.0, %v13_v1 }
   0x3   :  { %7 = vsyncpa [#allocation3], 0  ;;  %85 = vlog2.f32 %v13_v1  ;;  %v14_v27 = vld [vmem:[%s145_s1] sm:$0xff]  ;;  %v15_v29 = vld [vmem:[%s145_s1 + $0x8] sm:$0xff]  ;;  %s113_s16 = smov [#allocation2]   ;;  %vm64_vm2 = vcmask 0  }
   0x4   :  { %v24_v4 = vadd.f32 1.0, %v22_v2  ;;  %v33_v5 = vadd.f32 1.0, %v23_v3  ;;  %v27_v6 = vmul.f32 -0.5, %v22_v2  ;;  %v36_v7 = vmul.f32 -0.5, %v23_v3  ;;  %s72_s1 = sshll.u32 %s113_s16, 4  ;;  %s73_s1 = int_to_ptr.vmem [resolvable:$true] %s72_s1 }
   0x5   :  { %v30_v10 = vand.u32 2147483647, %v22_v2  ;;  %v39_v13 = vand.u32 2147483647, %v23_v3  ;;  %s91_s18 = scalar_lea.vmem %s73_s1, 16  ;;  %s95_s19 = scalar_lea.vmem %s73_s1, 32 }
   0x6   :  { %87 = vlog2.f32 %v24_v4  ;;  %v28_v8 = vadd.f32 1.0, %v27_v6  ;;  %v37_v11 = vadd.f32 1.0, %v36_v7  ;;  %p92_p0 = scmp.ne.s32.totalorder %s73_s1, %s91_s18  ;;  %p96_p1 = scmp.lt.s32.totalorder %s73_s1, %s73_s1 }
   0x7   :  { %89 = vlog2.f32 %v33_v5  ;;  %vm31_vm0 = vcmp.lt.f32.partialorder %v30_v10, 0.0004427343  ;;  %vm40_vm1 = vcmp.lt.f32.partialorder %v39_v13, 0.0004427343  ;;  %p97_p2 = scmp.lt.s32.totalorder %s95_s19, %s91_s18 }
   0x8   :  { %v29_v16 = vmul.f32 %v28_v8, %v22_v2  ;;  %v38_v18 = vmul.f32 %v37_v11, %v23_v3 }
   0x9   :  { %p98_p3 = por %p97_p2, %p96_p1 }
   0xb   :  { %p99_p4 = pnand %p98_p3, %p92_p0 }
   0xf   :  { %v84_v9 = vpop.eup %83 }
  0x10   :  { %v86_v12 = vpop.eup %85  ;;  %v17_v14 = vmul.f32 0.6931472, %v84_v9 }
  0x11   :  { %v19_v15 = vmul.f32 0.6931472, %v86_v12 }
  0x12   :  { %v20_v21 = vmax.f32 %v17_v14, -100.0 }
  0x13   :  { %v88_v17 = vpop.eup %87  ;;  %v21_v23 = vmax.f32 %v19_v15, -100.0 }
  0x14   :  { %v90_v19 = vpop.eup %89  ;;  %v26_v20 = vmul.f32 0.6931472, %v88_v17 }
  0x15   :  { %v35_v22 = vmul.f32 0.6931472, %v90_v19 }
  0x16   :  { %v32_v24 = vsel %vm31_vm0, %v29_v16, %v26_v20 }
  0x17   :  { %v41_v25 = vsel %vm40_vm1, %v38_v18, %v35_v22  ;;  %v42_v26 = vmax.f32 %v32_v24, -100.0 }
  0x18   :  { %v43_v28 = vmax.f32 %v41_v25, -100.0 }
  0x19   :  { %v44_v30 = vsub.f32 %v20_v21, %v42_v26 }
  0x1a   :  { %v45_v31 = vsub.f32 %v21_v23, %v43_v28 }
  0x1b   :  { %v46_v32 = vmul.f32 %v44_v30, %v14_v27 }
  0x1c   :  { %v47_v33 = vmul.f32 %v45_v31, %v15_v29 }
  0x1d   :  { %v48_v34 = vadd.f32 %v46_v32, %v42_v26 }
  0x1e   :  { %v49_v35 = vadd.f32 %v47_v33, %v43_v28 }
  0x1f   :  { %v50_v36 = vsub.f32 0.0, %v48_v34 }
  0x20   :  { %v51_v37 = vsub.f32 0.0, %v49_v35 }
  0x22   :  { %v52_v38 = vadd.f32 %v51_v37, %v50_v36 }
  0x24   :  { %53 = vadd.xlane.f32.xlu0 %v52_v38 }
  0xad   :  { %v54_v39 = vpop.xlane.xlu0 %53 }
  0xae   :  { %v55_v40 = vrot.slane %v54_v39, 4 }
  0xb0   :  { %v56_v41 = vadd.f32 %v55_v40, %v54_v39 }
  0xb2   :  { %v57_v42 = vrot.slane %v56_v41, 2 }
  0xb4   :  { %v58_v43 = vadd.f32 %v57_v42, %v56_v41 }
  0xb6   :  { %v59_v44 = vrot.slane %v58_v43, 1 }
  0xb8   :  { %v60_v45 = vadd.f32 %v59_v44, %v58_v43 }
  0xba   :  { %80 = vpush %v60_v45 }
  0xeb   :  { %s81_s17 = spop %80 }
  0xec   :  { %v62_v46 = vstv %s81_s17 }
  0xed   :  { %v63_v47 = vmul.f32 0.00048828125, %v62_v46 }
  0xef   :  { %65 = vst.msk [vmem:[#allocation2] sm:$0x1] %vm64_vm2, %v63_v47 }
  0xf0   :  { %102 = shalt.err (!%p99_p4)
}
  0xf1   :  { %75 = dma.vmem_to_hbm [thread:$0]  %s73_s1, 16, %s146_s2, [#allocation3]  }
  0xf2   :  { %111 = dma.done.wait [#allocation3], 16  }
  0xf3   :  { %112 = vsyncadd [#allocation3], 4294967280 }
  0xf4   :  { %79 = vsyncpa [#allocation3], 1 }

</bundles_post_ra>
